<compile_context>
chip_gen: v6e
topology: v6e:2x2x1
jax: 0.10.0
libtpu: 0.0.40
codegen_flags: <defaults>
</compile_context>

<pallas_src>
import numpy as np
import jax
import jax.numpy as jnp
from jax.experimental import pallas as pl
from jax.experimental.pallas import tpu as pltpu


def _round_up(x, m):
    return ((x + m - 1) // m) * m


def _device_kind():
    try:
        return jax.devices()[0].device_kind.lower()
    except Exception:
        return ""


def patch_embed_kernel(x_ref, w_ref, b_ref, o_ref):
    # x_ref: (tm, K_pad) bf16 patch rows    (streamed)
    # w_ref: (K_pad, E_pad) bf16 weights    (VMEM-resident, constant index_map)
    # b_ref: (1, E_pad) f32 bias            (VMEM-resident)
    # o_ref: (tm, E_pad) out_dtype
    acc = jnp.dot(x_ref[...], w_ref[...], preferred_element_type=jnp.float32)
    o_ref[...] = (acc + b_ref[...]).astype(o_ref.dtype)


def prepare_patch_embed_params(weight, bias, *, input_format="NCHW"):
    """One-time projection prep — hoisted out of the per-step call path.

    weight: (E, C, ph, pw) Conv2d weight -> (K_pad, E_pad) bf16
    bias:   (E,)                         -> (1, E_pad) f32
    K flattening order matches the activation path: (C, ph, pw) for NCHW inputs,
    (ph, pw, C) for the NHWC fast path.
    """
    E, C, ph, pw = weight.shape
    K = C * ph * pw
    K_pad = _round_up(K, 128)
    E_pad = _round_up(E, 128)
    if input_format == "NCHW":
        w2d = weight.reshape(E, K).T                              # k = (c, pi, pj)
    elif input_format == "NHWC":
        w2d = jnp.transpose(weight, (2, 3, 1, 0)).reshape(K, E)   # k = (pi, pj, c)
    else:
        raise ValueError(input_format)
    w2d = jnp.pad(w2d.astype(jnp.bfloat16),
                  ((0, K_pad - K), (0, E_pad - E)))               # zero-pad: exact
    b2d = jnp.pad(bias.astype(jnp.float32).reshape(1, E),
                  ((0, 0), (0, E_pad - E)))
    return w2d, b2d


def patch_embed(x, w2d, b2d, embed_dim, patch_size, *, out_dtype=jnp.bfloat16,
                tm=None, input_format="NCHW"):
    """PatchEmbed forward.

    x: (B, C, H, W) for NCHW (PyTorch convention) or (B, H, W, C) for NHWC.
    w2d, b2d: prepared by prepare_patch_embed_params (matching input_format).
    returns: (B, num_patches, embed_dim) in out_dtype (bf16 by default — the
             f32 accumulate is unchanged, only the store narrows).
    """
    ph, pw = patch_size
    if input_format == "NCHW":
        B, C, H, W = x.shape
    elif input_format == "NHWC":
        B, H, W, C = x.shape
    else:
        raise ValueError(input_format)
    gh, gw = H // ph, W // pw
    num_patches = gh * gw
    K = C * ph * pw
    K_pad, E_pad = w2d.shape
    E = embed_dim
    M = B * num_patches

    # ---- patch extraction: one fused bf16 copy (cast + transpose [+ K pad]) ----
    xb = x.astype(jnp.bfloat16)
    if input_format == "NCHW":
        # (B,C,gh,ph,gw,pw) -> (B,gh,gw,C,ph,pw); k order (C,ph,pw) matches Conv2d.
        xp = jnp.transpose(xb.reshape(B, C, gh, ph, gw, pw), (0, 2, 4, 1, 3, 5))
    else:
        # NHWC fast path: (B,gh,ph,gw,pw,C) -> (B,gh,gw,ph,pw,C); the (pw, C)
        # minor dims stay contiguous -> much cheaper copy.  k order (ph,pw,C).
        xp = jnp.transpose(xb.reshape(B, gh, ph, gw, pw, C), (0, 1, 3, 2, 4, 5))
    xp = xp.reshape(M, K)
    if K_pad != K:
        # Applied right after the transpose so XLA fuses it into the same copy;
        # pad values are inert anyway (the weight's padded K rows are zero).
        xp = jnp.pad(xp, ((0, 0), (0, K_pad - K)))

    # ---- tile selection ----
    kind = _device_kind()
    is_v7 = ("v7" in kind) or ("tpu7" in kind)
    if tm is None:
        tm = 512 if "v5" in kind else 1024
    # Keep >= 2 M-blocks when M allows (v7x megacore), multiples of 256 fill the
    # MXU, tiny M rounded to 16 (bf16 sublane packing).
    half_m = _round_up(max(1, -(-M // 2)), 256)
    tm_eff = max(16, min(tm, half_m, _round_up(M, 16)))
    grid_m = pl.cdiv(M, tm_eff)

    # Streamed activation: deeper buffering only where DMA is exposed and there
    # are enough grid steps; keep default double-buffering on v7x (VMEM scarce).
    if grid_m >= 3 and not is_v7:
        x_spec = pl.BlockSpec((tm_eff, K_pad), lambda i: (i, 0),
                              pipeline_mode=pl.Buffered(3))
    else:
        x_spec = pl.BlockSpec((tm_eff, K_pad), lambda i: (i, 0))

    out_itemsize = np.dtype(out_dtype).itemsize
    cost = pl.CostEstimate(
        flops=2 * M * K_pad * E_pad,
        transcendentals=0,
        bytes_accessed=(M * K_pad * 2 + K_pad * E_pad * 2 + E_pad * 4
                        + M * E_pad * out_itemsize),
    )

    out = pl.pallas_call(
        patch_embed_kernel,
        out_shape=jax.ShapeDtypeStruct((M, E_pad), out_dtype),
        grid_spec=pltpu.PrefetchScalarGridSpec(
            num_scalar_prefetch=0,
            grid=(grid_m,),
            in_specs=[
                x_spec,
                pl.BlockSpec((K_pad, E_pad), lambda i: (0, 0)),  # resident weight
                pl.BlockSpec((1, E_pad), lambda i: (0, 0)),      # resident bias
            ],
            out_specs=pl.BlockSpec((tm_eff, E_pad), lambda i: (i, 0)),
        ),
        compiler_params=pltpu.CompilerParams(
            dimension_semantics=("parallel",),  # M blocks shard across TCs
        ),
        cost_estimate=cost,
    )(xp, w2d, b2d)

    if E_pad != E:
        # Strided copy of the output; free when embed_dim is a multiple of 128.
        out = out[:, :E]
    return out.reshape(B, num_patches, E)


def _reference(x, weight, bias, patch_size):
    # Pure-JAX f32 reference for a stride==kernel Conv2d + flatten + transpose.
    B, C, H, W = x.shape
    ph, pw = patch_size
    gh, gw = H // ph, W // pw
    E = weight.shape[0]
    xp = jnp.transpose(x.reshape(B, C, gh, ph, gw, pw), (0, 2, 4, 1, 3, 5))
    xp = xp.reshape(B, gh * gw, C * ph * pw)
    return jnp.einsum("bpk,ek->bpe", xp, weight.reshape(E, -1)) + bias


def _run_case(key, B, C, H, W, ph, pw, E, tm=None):
    kx, kw, kb = jax.random.split(key, 3)
    x = jax.random.normal(kx, (B, C, H, W), dtype=jnp.float32)
    weight = jax.random.normal(kw, (E, C, ph, pw), dtype=jnp.float32) * 0.02
    bias = jax.random.normal(kb, (E,), dtype=jnp.float32) * 0.02

    ref = _reference(x, weight, bias, (ph, pw))
    gh, gw = H // ph, W // pw

    # NCHW path (matches the PyTorch module's convention).
    w2d, b2d = prepare_patch_embed_params(weight, bias, input_format="NCHW")
    out = patch_embed(x, w2d, b2d, E, (ph, pw), tm=tm, input_format="NCHW")
    out = jax.block_until_ready(out)
    assert out.shape == (B, gh * gw, E), out.shape
    assert out.dtype == jnp.bfloat16, out.dtype
    err = float(jnp.max(jnp.abs(out.astype(jnp.float32) - ref)))
    assert jnp.allclose(out.astype(jnp.float32), ref, atol=2e-2, rtol=2e-2), err

    # NHWC fast path (same math, cheaper host-side rearrange).
    x_nhwc = jnp.transpose(x, (0, 2, 3, 1))
    w2d_h, b2d_h = prepare_patch_embed_params(weight, bias, input_format="NHWC")
    out_h = patch_embed(x_nhwc, w2d_h, b2d_h, E, (ph, pw), tm=tm,
                        input_format="NHWC")
    out_h = jax.block_until_ready(out_h)
    err_h = float(jnp.max(jnp.abs(out_h.astype(jnp.float32) - ref)))
    assert jnp.allclose(out_h.astype(jnp.float32), ref, atol=2e-2, rtol=2e-2), err_h


if __name__ == "__main__":
    key = jax.random.PRNGKey(0)
    k1, k2 = jax.random.split(key)

    # Small aligned shape: K=256, E=128, M=16 -> single tile, default tm path.
    _run_case(k1, B=4, C=4, H=16, W=16, ph=8, pw=8, E=128)

    # Unaligned ViT-like shape: C=3 -> K=192 (padded to 256), E=96 (padded to
    # 128), M=448 with tm=128 -> 4 M-tiles incl. a partial tail block, and the
    # Buffered(3) activation path on v5e/v6e.
    _run_case(k2, B=112, C=3, H=16, W=16, ph=8, pw=8, E=96, tm=128)

    print("KERNEL_OK")
</pallas_src>

<mosaic_0001>
module attributes {stable_mosaic.version = 11 : i64} {
  func.func @patch_embed_kernel(%arg0: i32, %arg1: memref<16x256xbf16, #tpu.memory_space<vmem>>, %arg2: memref<256x128xbf16, #tpu.memory_space<vmem>>, %arg3: memref<1x128xf32, #tpu.memory_space<vmem>>, %arg4: memref<16x128xbf16, #tpu.memory_space<vmem>>) attributes {dimension_semantics = [#tpu.dimension_semantics<parallel>], iteration_bounds = array<i64: 1>, scalar_prefetch = 0 : i64, scratch_operands = 0 : i64, tpu.core_type = #tpu.core_type<tc>, window_params = [{transform_indices = @transform_0, window_bounds = array<i64: 16, 256>}, {pipeline_mode = #tpu.pipeline_mode<synchronous>, transform_indices = @transform_1, window_bounds = array<i64: 256, 128>}, {pipeline_mode = #tpu.pipeline_mode<synchronous>, transform_indices = @transform_2, window_bounds = array<i64: 1, 128>}, {transform_indices = @transform_3, window_bounds = array<i64: 16, 128>}]} {
    %c0 = arith.constant 0 : index
    %c0_0 = arith.constant 0 : index
    %0 = vector.load %arg1[%c0, %c0_0] : memref<16x256xbf16, #tpu.memory_space<vmem>>, vector<16x256xbf16>
    %c0_1 = arith.constant 0 : index
    %c0_2 = arith.constant 0 : index
    %1 = vector.load %arg2[%c0_1, %c0_2] : memref<256x128xbf16, #tpu.memory_space<vmem>>, vector<256x128xbf16>
    %cst = arith.constant dense<0.000000e+00> : vector<16x128xf32>
    %2 = tpu.matmul %0, %1, %cst {dimension_numbers = #tpu.dot_dimension_numbers<[1], [0], [0], [1], [0, 0, 1, 1], [], []>} : vector<16x256xbf16>, vector<256x128xbf16>, vector<16x128xf32> -> vector<16x128xf32>
    %c0_3 = arith.constant 0 : index
    %c0_4 = arith.constant 0 : index
    %3 = vector.load %arg3[%c0_3, %c0_4] : memref<1x128xf32, #tpu.memory_space<vmem>>, vector<1x128xf32>
    %4 = vector.broadcast %3 : vector<1x128xf32> to vector<16x128xf32>
    %5 = arith.addf %2, %4 : vector<16x128xf32>
    %6 = arith.truncf %5 : vector<16x128xf32> to vector<16x128xbf16>
    %c0_5 = arith.constant 0 : index
    %c0_6 = arith.constant 0 : index
    %7 = vector.load %arg4[%c0_5, %c0_6] : memref<16x128xbf16, #tpu.memory_space<vmem>>, vector<16x128xbf16>
    tpu.vector_store %arg4[%c0_5, %c0_6], %6 {strides = array<i32>} : memref<16x128xbf16, #tpu.memory_space<vmem>>, vector<16x128xbf16>,
    return
  }
  func.func @transform_0(%arg0: i32) -> (i32, i32) {
    %c0_i32 = arith.constant 0 : i32
    %c0_i32_0 = arith.constant 0 : i32
    return %arg0, %c0_i32 : i32, i32
  }
  func.func @transform_1(%arg0: i32) -> (i32, i32) {
    %c0_i32 = arith.constant 0 : i32
    %c0_i32_0 = arith.constant 0 : i32
    %c0_i32_1 = arith.constant 0 : i32
    return %c0_i32, %c0_i32_0 : i32, i32
  }
  func.func @transform_2(%arg0: i32) -> (i32, i32) {
    %c0_i32 = arith.constant 0 : i32
    %c0_i32_0 = arith.constant 0 : i32
    %c0_i32_1 = arith.constant 0 : i32
    return %c0_i32, %c0_i32_0 : i32, i32
  }
  func.func @transform_3(%arg0: i32) -> (i32, i32) {
    %c0_i32 = arith.constant 0 : i32
    %c0_i32_0 = arith.constant 0 : i32
    return %arg0, %c0_i32 : i32, i32
  }
}

</mosaic_0001>

<bundles_post_ra>
// kernel: tpu_custom_call.1
= control target key start
LH: loop header
LB: loop body
LE: loop exit
PB: predicated region body
PF: predicated region fallthrough
CT: control target
= control target key end

     0   :  { %8 = vsyncpa [#allocation3], 0  ;;  %s447_s0 = inlined_call_operand.hbm [shape: bf16[16,256], index: 0, kind: input, shape index: {}]   ;;  %s448_s1 = inlined_call_operand.hbm [shape: bf16[256,128], index: 1, kind: input, shape index: {}]   ;;  %s449_s2 = inlined_call_operand.vmem [shape: f32[1,128], index: 2, kind: input, shape index: {}]   ;;  %s450_s3 = inlined_call_operand.hbm [shape: bf16[16,128], index: 3, kind: output, shape index: {}]  }
   0x1   :  { %9 = vsyncpa [#allocation6], 0 }
   0x2   :  { %10 = vsyncpa [#allocation4], 0  ;;  %s402_s12 = smov [#allocation2]  }
   0x3   :  { %s16_s13 = sshll.u32 %s402_s12, 4  ;;  %s17_s13 = int_to_ptr.vmem [resolvable:$true] %s16_s13 }
   0x4   :  { %s344_s14 = scalar_lea.vmem %s17_s13, 256  ;;  %p349_p1 = scmp.lt.s32.totalorder %s17_s13, %s17_s13 }
   0x5   :  { %p345_p0 = scmp.ne.s32.totalorder %s17_s13, %s344_s14  ;;  %p350_p2 = scmp.lt.s32.totalorder %s344_s14, %s344_s14 }
   0x7   :  { %p351_p3 = por %p350_p2, %p349_p1 }
   0x9   :  { %p352_p4 = pnand %p351_p3, %p345_p0 }
   0xb   :  { %355 = shalt.err (!%p352_p4)
}
   0xc   :  { %s403_s15 = smov 128   ;;  %s404_s16 = smov 8  }
   0xd   :  { %22 = dma.hbm_to_vmem [thread:$0]  %s447_s0, 256, %s17_s13, [#allocation3], %s403_s15, %s403_s15, %s404_s16  }
   0xe   :  { %s405_s19 = smov [#allocation5]  }
   0xf   :  { %s28_s20 = sshll.u32 %s405_s19, 4  ;;  %s29_s20 = int_to_ptr.vmem [resolvable:$true] %s28_s20 }
  0x10   :  { %s364_s21 = scalar_lea.vmem %s29_s20, 2048  ;;  %p369_p6 = scmp.lt.s32.totalorder %s29_s20, %s29_s20 }
  0x11   :  { %p365_p5 = scmp.ne.s32.totalorder %s29_s20, %s364_s21  ;;  %p370_p7 = scmp.lt.s32.totalorder %s364_s21, %s364_s21 }
  0x13   :  { %p371_p8 = por %p370_p7, %p369_p6 }
  0x15   :  { %p372_p9 = pnand %p371_p8, %p365_p5 }
  0x17   :  { %375 = shalt.err (!%p372_p9)
}
  0x18   :  { %s406_s22 = smov 64   ;;  %s407_s23 = smov 4  }
  0x19   :  { %34 = dma.hbm_to_vmem [thread:$0]  %s448_s1, 2048, %s29_s20, [#allocation6], %s406_s22, %s406_s22, %s407_s23  }
  0x1a   :  { %396 = dma.done.wait [#allocation3], 256  }
  0x1b   :  { %397 = vsyncadd [#allocation3], 4294967040 }
  0x1c   :  { %398 = dma.done.wait [#allocation6], 2048  }
  0x1d   :  { %399 = vsyncadd [#allocation6], 4294965248  ;;  %v317_v0 = vld [vmem:[#allocation5 + $0x78] sm:$0xff]   ;;  %v319_v2 = vld [vmem:[#allocation5 + $0x70] sm:$0xff]   ;;  %s408_s26 = smov [#allocation7]  }
  0x1e   :  { %v318_v1 = vld [vmem:[#allocation5 + $0x38] sm:$0xff]   ;;  %288 = vmatprep.subr.bf16.mxu0 %v317_v0  ;;  %v320_v3 = vld [vmem:[#allocation5 + $0x30] sm:$0xff]   ;;  %v321_v4 = vld [vmem:[#allocation5 + $0x68] sm:$0xff]   ;;  %s247_s27 = sshll.u32 %s408_s26, 4  ;;  %s248_s27 = int_to_ptr.vmem [resolvable:$true] %s247_s27 }
  0x1f   :  { %289 = vmatpush3.bf16.msra.mxu0 %v318_v1  ;;  %v322_v5 = vld [vmem:[#allocation5 + $0x28] sm:$0xff]   ;;  %v323_v6 = vld [vmem:[#allocation5 + $0x60] sm:$0xff]   ;;  %v325_v8 = vld [vmem:[#allocation5 + $0x58] sm:$0xff]   ;;  %s376_s28 = scalar_lea.vmem %s248_s27, 128  ;;  %p381_p11 = scmp.lt.s32.totalorder %s248_s27, %s248_s27 }
  0x20   :  { %290 = vmatprep.subr.bf16.mxu0 %v319_v2  ;;  %v324_v7 = vld [vmem:[#allocation5 + $0x20] sm:$0xff]   ;;  %v326_v9 = vld [vmem:[#allocation5 + $0x18] sm:$0xff]   ;;  %v327_v10 = vld [vmem:[#allocation5 + $0x50] sm:$0xff]   ;;  %p377_p10 = scmp.ne.s32.totalorder %s248_s27, %s376_s28  ;;  %p382_p12 = scmp.lt.s32.totalorder %s376_s28, %s376_s28 }
  0x21   :  { %v335_v11 = vld [vmem:[#allocation2 + $0x4] ss:$8 sps:$4 sm:$0xff]   ;;  %v329_v13 = vld [vmem:[#allocation5 + $0x48] sm:$0xff]   ;;  %v331_v15 = vld [vmem:[#allocation5 + $0x40] sm:$0xff]  }
  0x22   :  { %v328_v12 = vld [vmem:[#allocation5 + $0x10] sm:$0xff]   ;;  %223 = vmatprep.mubr.bf16.mxu0 %v335_v11  ;;  %v330_v14 = vld [vmem:[#allocation5 + $0x8] sm:$0xff]   ;;  %v332_v16 = vld [vmem:[#allocation5] sm:$0xff]   ;;  %p383_p13 = por %p382_p12, %p381_p11 }
  0x23   :  { %291 = vmatpush3.bf16.msra.mxu0 %v320_v3  ;;  %v333_v17 = vld [vmem:[#allocation2] ss:$8 sps:$4 sm:$0xff]  }
  0x24   :  { %292 = vmatprep.subr.bf16.mxu0 %v321_v4  ;;  %v260_v22 = vld [vmem:[%s449_s2] ss:$0 sm:$0xff]  ;;  %p384_p0 = pnand %p383_p13, %p377_p10 }
  0x27   :  { %293 = vmatpush3.bf16.msra.mxu0 %v322_v5 }
  0x28   :  { %294 = vmatprep.subr.bf16.mxu0 %v323_v6 }
  0x2b   :  { %295 = vmatpush3.bf16.msra.mxu0 %v324_v7 }
  0x2c   :  { %296 = vmatprep.subr.bf16.mxu0 %v325_v8 }
  0x2f   :  { %297 = vmatpush3.bf16.msra.mxu0 %v326_v9 }
  0x30   :  { %298 = vmatprep.subr.bf16.mxu0 %v327_v10 }
  0x33   :  { %299 = vmatpush3.bf16.msra.mxu0 %v328_v12 }
  0x34   :  { %300 = vmatprep.subr.bf16.mxu0 %v329_v13 }
  0x37   :  { %301 = vmatpush3.bf16.msra.mxu0 %v330_v14 }
  0x38   :  { %302 = vmatprep.subr.bf16.mxu0 %v331_v15 }
  0x3b   :  { %303 = vmatpush3.bf16.msra.mxu0 %v332_v16 }
  0x3e   :  { %224 = vmatmul.mubr.bf16.vlgmr.msra.gmra.mxu0 %v333_v17 }
  0xfe   :  { %v304_v18 = vpop.f32.mrf.mxu0 }
 0x100   :  { %v305_v19 = vpop.f32.mrf.mxu0 }
 0x101   :  { %v306_v21 = vadd.f32 %v305_v19, %v304_v18 }
 0x102   :  { %v307_v20 = vpop.f32.mrf.mxu0 }
 0x103   :  { %v226_v25 = vadd.f32 %v306_v21, %v260_v22 }
 0x104   :  { %v308_v23 = vpop.f32.mrf.mxu0 }
 0x105   :  { %v309_v24 = vadd.f32 %v308_v23, %v307_v20 }
 0x107   :  { %v229_v26 = vadd.f32 %v309_v24, %v260_v22 }
 0x109   :  { %v286_v27 = vpack.c.bf16 %v229_v26, %v226_v25 }
 0x10b   :  { %287 = vst [vmem:[#allocation7] sm:$0xff] %v286_v27  }
 0x10c   :  { %387 = shalt.err (!%p384_p0)
}
 0x10d   :  { %253 = dma.vmem_to_hbm [thread:$0]  %s248_s27, 128, %s450_s3, [#allocation4], %s406_s22, %s406_s22, %s407_s23  }
 0x10e   :  { %400 = dma.done.wait [#allocation4], 128  }
 0x10f   :  { %401 = vsyncadd [#allocation4], 4294967168 }
 0x110   :  { %257 = vsyncpa [#allocation3], 1 }
 0x111   :  { %258 = vsyncpa [#allocation6], 1 }
 0x112   :  { %259 = vsyncpa [#allocation4], 1 }

</bundles_post_ra>
